<compile_context>
chip_gen: v7x
topology: tpu7x:2x2x1
jax: 0.10.0
libtpu: 0.0.40
codegen_flags: <defaults>
</compile_context>

<pallas_src>
import functools

import jax
import jax.numpy as jnp
from jax import lax
from jax.experimental import pallas as pl
from jax.experimental.pallas import tpu as pltpu


_LANE = 128            # lane width == D-chunk width used inside the kernel
_MAX_BLOCK_ROWS = 2048  # cap so lane-padded (tb, 1) intermediates stay small


def _contrastive_loss_kernel(x_ref, y_ref, t_ref, o_ref, *, margin, rem_rows):
    """One row tile of the contrastive loss; writes its partial sum to o_ref[0, 0].

    rem_rows: number of valid rows in the LAST tile (0 => every tile is full, no
    masking is emitted at all).
    """
    i = pl.program_id(0)
    tb, d = x_ref.shape

    n_full = d // _LANE
    rem = d - n_full * _LANE

    dot = jnp.zeros((tb, 1), jnp.float32)
    nx2 = jnp.zeros((tb, 1), jnp.float32)
    ny2 = jnp.zeros((tb, 1), jnp.float32)

    # Chunked D reduction: static (trace-time) loop so every slice is a static,
    # 128-aligned lane-column load; accumulate into lane-dense (tb, 128) f32
    # accumulators (VPU adds), one XLU cross-lane reduce per quantity at the end.
    if n_full > 0:
        da = jnp.zeros((tb, _LANE), jnp.float32)
        xa = jnp.zeros((tb, _LANE), jnp.float32)
        ya = jnp.zeros((tb, _LANE), jnp.float32)
        for c in range(n_full):
            xc = x_ref[:, c * _LANE:(c + 1) * _LANE].astype(jnp.float32)
            yc = y_ref[:, c * _LANE:(c + 1) * _LANE].astype(jnp.float32)
            da = da + xc * yc
            xa = xa + xc * xc
            ya = ya + yc * yc
        dot = dot + jnp.sum(da, axis=-1, keepdims=True)
        nx2 = nx2 + jnp.sum(xa, axis=-1, keepdims=True)
        ny2 = ny2 + jnp.sum(ya, axis=-1, keepdims=True)

    if rem > 0:
        xr = x_ref[:, n_full * _LANE:d].astype(jnp.float32)
        yr = y_ref[:, n_full * _LANE:d].astype(jnp.float32)
        dot = dot + jnp.sum(xr * yr, axis=-1, keepdims=True)
        nx2 = nx2 + jnp.sum(xr * xr, axis=-1, keepdims=True)
        ny2 = ny2 + jnp.sum(yr * yr, axis=-1, keepdims=True)

    # cos = dot / (max(||x||, eps) * max(||y||, eps)), written with EUP rsqrt using
    # max(sqrt(a), eps) == sqrt(max(a, eps^2)).
    eps2 = jnp.float32(1e-16)  # (1e-8)**2
    cos = dot * lax.rsqrt(jnp.maximum(nx2, eps2)) * lax.rsqrt(jnp.maximum(ny2, eps2))

    t = t_ref[...]  # (tb, 1) float32
    hinge = jnp.maximum(jnp.float32(margin) - cos, jnp.float32(0.0))
    per_row = (1.0 - t) * cos * cos + t * hinge * hinge  # (tb, 1)

    def _store(val):
        # Single unmasked (8, 128) store: partial sum at [0, 0], zeros elsewhere.
        r = lax.broadcasted_iota(jnp.int32, o_ref.shape, 0)
        c = lax.broadcasted_iota(jnp.int32, o_ref.shape, 1)
        o_ref[...] = jnp.where((r + c) == 0, val, jnp.float32(0.0))

    if rem_rows == 0:
        # Every tile is full: no masking anywhere on the hot path.
        _store(jnp.sum(per_row))
    else:
        last = pl.num_programs(0) - 1

        @pl.when(i != last)
        def _():
            _store(jnp.sum(per_row))

        @pl.when(i == last)
        def _():
            # Mask rows past the true batch size.  This must stay a true select
            # (not a multiplicative mask): out-of-bounds rows may hold garbage
            # that produced NaN/Inf upstream, and select does not propagate it.
            rows = lax.broadcasted_iota(jnp.int32, per_row.shape, 0)
            masked = jnp.where(rows < rem_rows, per_row, jnp.float32(0.0))
            _store(jnp.sum(masked))


def _vmem_limit_bytes():
    """Scoped-VMEM limit derived from physical VMEM: ~40 MiB on v7x, ~80 MiB on v5e/v6e."""
    try:
        cap = pltpu.get_tpu_info().vmem_capacity_bytes
    except Exception:
        cap = 64 * 1024 * 1024  # conservative fallback (v7x per-TC physical VMEM)
    return min(96 * 1024 * 1024, (cap * 5) // 8)


def _pick_block_rows(batch, dim, itemsize, vmem_limit):
    """Row-tile size budgeted against VMEM, incl. in-kernel temporaries."""
    # Per-row VMEM cost estimate:
    #   4 * D * itemsize : x and y native-dtype blocks, double-buffered
    #   ~1 KiB           : lane-padded (tb, 1) f32 target block, double-buffered
    #   ~3 KiB           : chunked (tb, 128) f32 accumulators / chunk temporaries
    #   ~4 KiB           : lane-padded (tb, 1) f32 intermediates (dot, cos, hinge, ...)
    per_row = 4 * dim * itemsize + 8192
    budget = vmem_limit // 2            # leave headroom vs. the scoped limit
    tb = budget // per_row
    tb = max(8, min(_MAX_BLOCK_ROWS, (tb // 8) * 8))
    if tb >= batch:
        if batch >= 16:
            # Guarantee >= 2 row tiles so a "parallel" grid axis keeps both v7x
            # TensorCores busy even when the whole batch would fit one tile.
            tb = (((batch + 1) // 2) + 7) // 8 * 8
        else:
            tb = batch                  # single tile: block equals full array dims
    return tb


def contrastive_loss(output1, output2, target, margin=1.0, block_rows=None):
    """Pallas TPU ContrastiveLoss.forward.

    output1, output2: (B, D) arrays (any float dtype; DMA'd at native width).
    target: (B,) array.  Returns a scalar float32 loss.
    """
    B, D = output1.shape
    itemsize = jnp.dtype(output1.dtype).itemsize
    vmem_limit = _vmem_limit_bytes()

    # TODO(synk): for extremely large D (one 8-row block exceeding the budget) add a
    # D-grid with cross-step accumulation; full-D row blocks are used here.
    tb = block_rows if block_rows is not None else _pick_block_rows(B, D, itemsize, vmem_limit)
    if tb > B:
        tb = B
    num_tiles = -(-B // tb)
    rem_rows = B % tb  # 0 => no masking needed anywhere

    t2 = target.reshape(B, 1).astype(jnp.float32)

    kernel = functools.partial(
        _contrastive_loss_kernel, margin=float(margin), rem_rows=rem_rows)

    partials = pl.pallas_call(
        kernel,
        out_shape=jax.ShapeDtypeStruct((num_tiles * 8, 128), jnp.float32),
        grid=(num_tiles,),
        in_specs=[
            pl.BlockSpec((tb, D), lambda i: (i, 0)),
            pl.BlockSpec((tb, D), lambda i: (i, 0)),
            pl.BlockSpec((tb, 1), lambda i: (i, 0)),
        ],
        out_specs=pl.BlockSpec((8, 128), lambda i: (i, 0)),
        compiler_params=pltpu.CompilerParams(
            dimension_semantics=("parallel",),
            vmem_limit_bytes=int(vmem_limit),
        ),
    )(output1, output2, t2)

    return jnp.sum(partials) * jnp.float32(1.0 / B)


def _reference(output1, output2, target, margin=1.0):
    x = output1.astype(jnp.float32)
    y = output2.astype(jnp.float32)
    t = target.astype(jnp.float32)
    eps = 1e-8
    dot = jnp.sum(x * y, axis=-1)
    nx = jnp.sqrt(jnp.sum(x * x, axis=-1))
    ny = jnp.sqrt(jnp.sum(y * y, axis=-1))
    cos = dot / (jnp.maximum(nx, eps) * jnp.maximum(ny, eps))
    loss = (1.0 - t) * cos ** 2 + t * jnp.maximum(margin - cos, 0.0) ** 2
    return jnp.mean(loss)


if __name__ == "__main__":
    key = jax.random.PRNGKey(0)

    cases = [
        # (B, D, dtype, block_rows override, tolerance)
        (8, 32, jnp.float32, None, 1e-5),      # single tiny tile, D < 128 (remainder-only path)
        (20, 128, jnp.float32, 8, 1e-5),       # forced 3-tile grid + partial last tile (mask path)
        (20, 128, jnp.float32, None, 1e-5),    # auto tb: >=2 tiles for B>=16, masked tail
        (24, 160, jnp.float32, None, 1e-5),    # D = 128 chunk + 32 remainder, auto tiling
        (16, 256, jnp.bfloat16, 8, 1e-4),      # native bf16 HBM->VMEM, chunked f32 compute
    ]
    for B, D, dtype, br, tol in cases:
        key, k1, k2, k3 = jax.random.split(key, 4)
        o1 = jax.random.normal(k1, (B, D), dtype=jnp.float32).astype(dtype)
        o2 = jax.random.normal(k2, (B, D), dtype=jnp.float32).astype(dtype)
        tgt = jax.random.bernoulli(k3, 0.5, (B,)).astype(jnp.float32)

        loss = contrastive_loss(o1, o2, tgt, margin=1.0, block_rows=br)
        jax.block_until_ready(loss)

        ref = _reference(o1, o2, tgt, margin=1.0)
        if not jnp.allclose(loss, ref, atol=tol, rtol=tol):
            raise AssertionError(
                f"mismatch B={B} D={D} dtype={dtype} br={br}: kernel={loss} ref={ref}")

    print("KERNEL_OK")
</pallas_src>

<mosaic_0001>
module attributes {stable_mosaic.version = 11 : i64} {
  func.func @_contrastive_loss_kernel(%arg0: i32, %arg1: memref<8x32xf32, #tpu.memory_space<vmem>>, %arg2: memref<8x32xf32, #tpu.memory_space<vmem>>, %arg3: memref<8x1xf32, #tpu.memory_space<vmem>>, %arg4: memref<8x128xf32, #tpu.memory_space<vmem>>) attributes {dimension_semantics = [#tpu.dimension_semantics<parallel>], iteration_bounds = array<i64: 1>, scalar_prefetch = 0 : i64, scratch_operands = 0 : i64, tpu.core_type = #tpu.core_type<tc>, window_params = [{transform_indices = @transform_0, window_bounds = array<i64: 8, 32>}, {transform_indices = @transform_1, window_bounds = array<i64: 8, 32>}, {transform_indices = @transform_2, window_bounds = array<i64: 8, 1>}, {transform_indices = @transform_3, window_bounds = array<i64: 8, 128>}]} {
    %cst = arith.constant 0.000000e+00 : f32
    %0 = vector.broadcast %cst : f32 to vector<8x1xf32>
    %cst_0 = arith.constant 0.000000e+00 : f32
    %1 = vector.broadcast %cst_0 : f32 to vector<8x1xf32>
    %cst_1 = arith.constant 0.000000e+00 : f32
    %2 = vector.broadcast %cst_1 : f32 to vector<8x1xf32>
    %c0 = arith.constant 0 : index
    %c0_2 = arith.constant 0 : index
    %3 = vector.load %arg1[%c0, %c0_2] : memref<8x32xf32, #tpu.memory_space<vmem>>, vector<8x32xf32>
    %c0_3 = arith.constant 0 : index
    %c0_4 = arith.constant 0 : index
    %4 = vector.load %arg2[%c0_3, %c0_4] : memref<8x32xf32, #tpu.memory_space<vmem>>, vector<8x32xf32>
    %5 = arith.mulf %3, %4 : vector<8x32xf32>
    %cst_5 = arith.constant dense<0.000000e+00> : vector<8xf32>
    %6 = vector.multi_reduction <add>, %5, %cst_5 [1] : vector<8x32xf32> to vector<8xf32>
    %7 = vector.shape_cast %6 : vector<8xf32> to vector<8x1xf32>
    %8 = arith.addf %0, %7 : vector<8x1xf32>
    %9 = arith.mulf %3, %3 : vector<8x32xf32>
    %cst_6 = arith.constant dense<0.000000e+00> : vector<8xf32>
    %10 = vector.multi_reduction <add>, %9, %cst_6 [1] : vector<8x32xf32> to vector<8xf32>
    %11 = vector.shape_cast %10 : vector<8xf32> to vector<8x1xf32>
    %12 = arith.addf %1, %11 : vector<8x1xf32>
    %13 = arith.mulf %4, %4 : vector<8x32xf32>
    %cst_7 = arith.constant dense<0.000000e+00> : vector<8xf32>
    %14 = vector.multi_reduction <add>, %13, %cst_7 [1] : vector<8x32xf32> to vector<8xf32>
    %15 = vector.shape_cast %14 : vector<8xf32> to vector<8x1xf32>
    %16 = arith.addf %2, %15 : vector<8x1xf32>
    %cst_8 = arith.constant 1.000000e-16 : f32
    %17 = vector.broadcast %cst_8 : f32 to vector<8x1xf32>
    %18 = arith.maximumf %12, %17 : vector<8x1xf32>
    %19 = math.rsqrt %18 : vector<8x1xf32>
    %20 = arith.mulf %8, %19 : vector<8x1xf32>
    %cst_9 = arith.constant 1.000000e-16 : f32
    %21 = vector.broadcast %cst_9 : f32 to vector<8x1xf32>
    %22 = arith.maximumf %16, %21 : vector<8x1xf32>
    %23 = math.rsqrt %22 : vector<8x1xf32>
    %24 = arith.mulf %20, %23 : vector<8x1xf32>
    %c0_10 = arith.constant 0 : index
    %c0_11 = arith.constant 0 : index
    %25 = vector.load %arg3[%c0_10, %c0_11] : memref<8x1xf32, #tpu.memory_space<vmem>>, vector<8x1xf32>
    %cst_12 = arith.constant 1.000000e+00 : f32
    %26 = vector.broadcast %cst_12 : f32 to vector<8x1xf32>
    %27 = arith.subf %26, %24 : vector<8x1xf32>
    %cst_13 = arith.constant 0.000000e+00 : f32
    %28 = vector.broadcast %cst_13 : f32 to vector<8x1xf32>
    %29 = arith.maximumf %27, %28 : vector<8x1xf32>
    %cst_14 = arith.constant 1.000000e+00 : f32
    %30 = vector.broadcast %cst_14 : f32 to vector<8x1xf32>
    %31 = arith.subf %30, %25 : vector<8x1xf32>
    %32 = arith.mulf %31, %24 : vector<8x1xf32>
    %33 = arith.mulf %32, %24 : vector<8x1xf32>
    %34 = arith.mulf %25, %29 : vector<8x1xf32>
    %35 = arith.mulf %34, %29 : vector<8x1xf32>
    %36 = arith.addf %33, %35 : vector<8x1xf32>
    %37 = vector.shape_cast %36 : vector<8x1xf32> to vector<1x8x1xf32>
    %cst_15 = arith.constant dense<0.000000e+00> : vector<1xf32>
    %38 = vector.multi_reduction <add>, %37, %cst_15 [1, 2] : vector<1x8x1xf32> to vector<1xf32>
    %39 = vector.shape_cast %38 : vector<1xf32> to vector<1x1x1xf32>
    %40 = vector.extract %39[0, 0, 0] : f32 from vector<1x1x1xf32>
    %41 = tpu.iota {dimensions = array<i32: 0>} : vector<8x128xi32>
    %42 = tpu.iota {dimensions = array<i32: 1>} : vector<8x128xi32>
    %43 = arith.addi %41, %42 : vector<8x128xi32>
    %c0_i32 = arith.constant 0 : i32
    %44 = vector.broadcast %c0_i32 : i32 to vector<8x128xi32>
    %45 = arith.cmpi eq, %43, %44 : vector<8x128xi32>
    %cst_16 = arith.constant 0.000000e+00 : f32
    %46 = vector.broadcast %40 : f32 to vector<8x128xf32>
    %47 = vector.broadcast %cst_16 : f32 to vector<8x128xf32>
    %48 = arith.select %45, %46, %47 : vector<8x128xi1>, vector<8x128xf32>
    %c0_17 = arith.constant 0 : index
    %c0_18 = arith.constant 0 : index
    %49 = vector.load %arg4[%c0_17, %c0_18] : memref<8x128xf32, #tpu.memory_space<vmem>>, vector<8x128xf32>
    tpu.vector_store %arg4[%c0_17, %c0_18], %48 {strides = array<i32>} : memref<8x128xf32, #tpu.memory_space<vmem>>, vector<8x128xf32>,
    return
  }
  func.func @transform_0(%arg0: i32) -> (i32, i32) {
    %c0_i32 = arith.constant 0 : i32
    %c0_i32_0 = arith.constant 0 : i32
    return %arg0, %c0_i32 : i32, i32
  }
  func.func @transform_1(%arg0: i32) -> (i32, i32) {
    %c0_i32 = arith.constant 0 : i32
    %c0_i32_0 = arith.constant 0 : i32
    return %arg0, %c0_i32 : i32, i32
  }
  func.func @transform_2(%arg0: i32) -> (i32, i32) {
    %c0_i32 = arith.constant 0 : i32
    %c0_i32_0 = arith.constant 0 : i32
    return %arg0, %c0_i32 : i32, i32
  }
  func.func @transform_3(%arg0: i32) -> (i32, i32) {
    %c0_i32 = arith.constant 0 : i32
    %c0_i32_0 = arith.constant 0 : i32
    return %arg0, %c0_i32 : i32, i32
  }
}

</mosaic_0001>

<bundles_post_ra>
// kernel: tpu_custom_call.1
= control target key start
LH: loop header
LB: loop body
LE: loop exit
PB: predicated region body
PF: predicated region fallthrough
CT: control target
= control target key end

     0   :  { %8 = vsyncpa [#allocation3], 0  ;;  %s203_s0 = inlined_call_operand.vmem [shape: f32[8,32], index: 0, kind: input, shape index: {}]   ;;  %s204_s1 = inlined_call_operand.hbm [shape: f32[8,32], index: 1, kind: input, shape index: {}]   ;;  %s205_s2 = inlined_call_operand.vmem [shape: f32[8,1], index: 2, kind: input, shape index: {}]   ;;  %s206_s3 = inlined_call_operand.hbm [shape: f32[8,128], index: 3, kind: output, shape index: {}]  }
   0x1   :  { %9 = vsyncpa [#allocation4], 0  ;;  %s151_s12 = smov [#allocation2]   ;;  %s103_s16 = scalar_lea.hbm %s204_s1, 128 }
   0x2   :  { %s18_s13 = sshll.u32 %s151_s12, 4  ;;  %p104_p0 = scmp.ne.s32.totalorder %s204_s1, %s103_s16  ;;  %s19_s13 = int_to_ptr.vmem [resolvable:$true] %s18_s13 }
   0x3   :  { %p107_p1 = scmp.lt.u32.totalorder %s103_s16, %s204_s1 }
   0x5   :  { %p109_p2 = pnand %p107_p1, %p104_p0 }
   0x7   :  { %112 = shalt.err (!%p109_p2)
}
   0x8   :  { %s113_s21 = scalar_lea.vmem %s19_s13, 128  ;;  %p118_p4 = scmp.lt.s32.totalorder %s19_s13, %s19_s13 }
   0x9   :  { %p114_p3 = scmp.ne.s32.totalorder %s19_s13, %s113_s21  ;;  %p119_p5 = scmp.lt.s32.totalorder %s113_s21, %s113_s21 }
   0xb   :  { %p120_p6 = por %p119_p5, %p118_p4 }
   0xd   :  { %p121_p7 = pnand %p120_p6, %p114_p3 }
   0xf   :  { %124 = shalt.err (!%p121_p7)
}
  0x10   :  { %21 = dma.hbm_to_vmem [thread:$0]  %s204_s1, 128, %s19_s13, [#allocation3]  }
  0x11   :  { %147 = dma.done.wait [#allocation3], 128  }
  0x12   :  { %148 = vsyncadd [#allocation3], 4294967168  ;;  %v27_v0 = vld [vmem:[%s203_s0] sm:$0xff]  ;;  %vm30_vm0 = vcmask 261120   ;;  %vm60_vm1 = vcmask 7168   ;;  %v71_v34 = vlaneseq }
  0x13   :  { %v28_v1 = vld [vmem:[#allocation2] sm:$0xff]  ;;  %v35_v2 = vmul.f32 %v27_v0, %v27_v0 }
  0x14   :  { %v40_v3 = vmul.f32 %v28_v1, %v28_v1  ;;  %v29_v4 = vmul.f32 %v28_v1, %v27_v0  ;;  %v51_v14 = vld [vmem:[%s205_s2] sm:$0xff]  ;;  %v72_v35 = vshrl.u32 %v71_v34, 7  ;;  %v74_v36 = vand.u32 127, %v71_v34  ;;  %s152_s2 = smov [#allocation5]  }
  0x15   :  { %v36_v5 = vsel %vm30_vm0, %v35_v2, 0.0  ;;  %v54_v18 = vsub.f32 1.0, %v51_v14  ;;  %s86_s26 = sshll.u32 %s152_s2, 4  ;;  %s87_s26 = int_to_ptr.vmem [resolvable:$true] %s86_s26 }
  0x16   :  { %v31_v6 = vsel %vm30_vm0, %v29_v4, 0.0  ;;  %37 = vadd.xlane.f32.xlu0 %v36_v5  ;;  %v41_v7 = vsel %vm30_vm0, %v40_v3, 0.0  ;;  %v75_v37 = vadd.s32 %v74_v36, %v72_v35  ;;  %s125_s28 = scalar_lea.vmem %s87_s26, 128  ;;  %p130_p9 = scmp.lt.s32.totalorder %s87_s26, %s87_s26 }
  0x17   :  { %32 = vadd.xlane.f32.xlu1 %v31_v6  ;;  %p126_p8 = scmp.ne.s32.totalorder %s87_s26, %s125_s28  ;;  %p131_p10 = scmp.lt.s32.totalorder %s125_s28, %s125_s28 }
  0x18   :  { %vm76_vm2 = vcmp.eq.s32.totalorder %v75_v37, 0 }
  0x19   :  { %p132_p11 = por %p131_p10, %p130_p9 }
  0x1a   :  { %42 = vadd.xlane.f32.xlu0 %v41_v7 }
  0x1b   :  { %p133_p12 = pnand %p132_p11, %p126_p8 }
  0xa3   :  { %v38_v8 = vpop.xlane.xlu0 %37 }
  0xa4   :  { %v45_v9 = vmax.f32 %v38_v8, 1e-16  ;;  %v33_v13 = vpop.xlane.xlu1 %32 }
  0xa6   :  { %99 = vrsqrt.f32 %v45_v9 }
  0xa7   :  { %v43_v10 = vpop.xlane.xlu0 %42 }
  0xa8   :  { %v48_v11 = vmax.f32 %v43_v10, 1e-16 }
  0xaa   :  { %101 = vrsqrt.f32 %v48_v11 }
  0xb0   :  { %v100_v12 = vpop.eup %99 }
  0xb1   :  { %v47_v15 = vmul.f32 %v100_v12, %v33_v13 }
  0xb4   :  { %v102_v16 = vpop.eup %101 }
  0xb5   :  { %v50_v17 = vmul.f32 %v102_v16, %v47_v15 }
  0xb7   :  { %v52_v19 = vsub.f32 1.0, %v50_v17  ;;  %v55_v21 = vmul.f32 %v54_v18, %v50_v17 }
  0xb9   :  { %v53_v20 = vmax.f32 %v52_v19, 0.0  ;;  %v56_v23 = vmul.f32 %v55_v21, %v50_v17 }
  0xbb   :  { %v57_v22 = vmul.f32 %v53_v20, %v51_v14 }
  0xbd   :  { %v58_v24 = vmul.f32 %v57_v22, %v53_v20 }
  0xbf   :  { %v59_v25 = vadd.f32 %v58_v24, %v56_v23 }
  0xc1   :  { %v61_v26 = vsel %vm60_vm1, %v59_v25, 0.0 }
  0xc2   :  { %62 = vadd.xlane.f32.xlu1 %v61_v26 }
 0x14f   :  { %v63_v27 = vpop.xlane.xlu1 %62 }
 0x150   :  { %v64_v28 = vrot.slane %v63_v27, 4 }
 0x152   :  { %v65_v29 = vadd.f32 %v64_v28, %v63_v27 }
 0x154   :  { %v66_v30 = vrot.slane %v65_v29, 2 }
 0x156   :  { %v67_v31 = vadd.f32 %v66_v30, %v65_v29 }
 0x158   :  { %v68_v32 = vrot.slane %v67_v31, 1 }
 0x15a   :  { %v69_v33 = vadd.f32 %v68_v32, %v67_v31 }
 0x15c   :  { %95 = vpush %v69_v33 }
 0x18d   :  { %s96_s27 = spop %95 }
 0x18e   :  { %v77_v38 = vstv %s96_s27 }
 0x18f   :  { %v78_v39 = vsel %vm76_vm2, %v77_v38, 0.0 }
 0x190   :  { %79 = vst [vmem:[#allocation5] sm:$0xff] %v78_v39 }
 0x191   :  { %136 = shalt.err (!%p133_p12)
}
 0x192   :  { %s137_s4 = scalar_lea.hbm %s206_s3, 128 }
 0x193   :  { %p138_p13 = scmp.ne.s32.totalorder %s206_s3, %s137_s4  ;;  %p141_p0 = scmp.lt.u32.totalorder %s137_s4, %s206_s3 }
 0x195   :  { %p143_p1 = pnand %p141_p0, %p138_p13 }
 0x197   :  { %146 = shalt.err (!%p143_p1)
}
 0x198   :  { %89 = dma.vmem_to_hbm [thread:$0]  %s87_s26, 128, %s206_s3, [#allocation4]  }
 0x199   :  { %149 = dma.done.wait [#allocation4], 128  }
 0x19a   :  { %150 = vsyncadd [#allocation4], 4294967168 }
 0x19b   :  { %93 = vsyncpa [#allocation3], 1 }
 0x19c   :  { %94 = vsyncpa [#allocation4], 1 }

</bundles_post_ra>
